<compile_context>
chip_gen: v7x
topology: tpu7x:2x2x1
jax: 0.10.0
libtpu: 0.0.40
codegen_flags: <defaults>
</compile_context>

<pallas_src>
import functools

import jax
import jax.numpy as jnp
from jax.experimental import pallas as pl
from jax.experimental.pallas import tpu as pltpu


def _decoder_kernel(
    # inputs
    x_ref, h0_ref, mem_ref,
    w_attn_ref, b_attn_ref,
    w_ir_ref, w_iz_ref, w_in_ref,
    w_hr_ref, w_hz_ref, w_hn_ref,
    b_r_ref, b_z_ref, b_in_ref, b_hn_ref,
    w_out_ref, b_out_ref,
    # outputs
    scores_ref, h_out_ref,
    # scratch
    h_state,
    *, compute_dtype,
):
    t = pl.program_id(0)

    # Initialize the hidden-state carry from the provided initial hidden state.
    @pl.when(t == 0)
    def _init():
        h_state[...] = h0_ref[...]

    h = h_state[...]          # (B, H) f32 carry
    x = x_ref[0]              # (B, H) input for this decode step

    # --- AttentionOverMemory: softmax(hidden @ W_attn^T + b) over memory slots ---
    hm = h.astype(compute_dtype)
    logits = jnp.dot(hm, w_attn_ref[...],
                     preferred_element_type=jnp.float32) + b_attn_ref[...]        # (B, M)
    logits = logits - jnp.max(logits, axis=-1, keepdims=True)
    e = jnp.exp(logits)
    inv_den = pl.reciprocal(jnp.sum(e, axis=-1, keepdims=True), approx=True)      # EUP
    attn_w = e * inv_den                                                          # (B, M)
    # MXU batched contraction: (B,1,M) @ (B,M,H) -> (B,1,H)
    ctx = jnp.einsum(
        "bqm,bmh->bqh",
        attn_w[:, None, :].astype(compute_dtype),
        mem_ref[...].astype(compute_dtype),
        preferred_element_type=jnp.float32,
    )[:, 0, :]                                                                    # (B, H)

    # --- add attention context to the decoder input ---
    gru_in = (x + ctx).astype(compute_dtype)                                      # (B, H)

    # --- GRU cell (1 layer, 1 step), per-gate matmuls (lane-clean), gate math in f32 ---
    i_r = jnp.dot(gru_in, w_ir_ref[...], preferred_element_type=jnp.float32)
    i_z = jnp.dot(gru_in, w_iz_ref[...], preferred_element_type=jnp.float32)
    i_n = jnp.dot(gru_in, w_in_ref[...], preferred_element_type=jnp.float32)
    h_r = jnp.dot(hm, w_hr_ref[...], preferred_element_type=jnp.float32)
    h_z = jnp.dot(hm, w_hz_ref[...], preferred_element_type=jnp.float32)
    h_n = jnp.dot(hm, w_hn_ref[...], preferred_element_type=jnp.float32)

    r = jax.nn.sigmoid(i_r + h_r + b_r_ref[...])
    z = jax.nn.sigmoid(i_z + h_z + b_z_ref[...])
    n = jnp.tanh(i_n + b_in_ref[...] + r * (h_n + b_hn_ref[...]))
    h_new = (1.0 - z) * n + z * h                                                 # (B, H) f32

    h_state[...] = h_new

    @pl.when(t == pl.num_programs(0) - 1)
    def _store_hidden():
        h_out_ref[...] = h_new

    # --- output head on batch element 0 (reference indexes output[0]) + log_softmax ---
    y = jnp.dot(h_new[0:1, :].astype(compute_dtype), w_out_ref[...],
                preferred_element_type=jnp.float32) + b_out_ref[...]              # (1, Opad)
    y = y - jnp.max(y, axis=-1, keepdims=True)
    scores_ref[0] = y - jnp.log(jnp.sum(jnp.exp(y), axis=-1, keepdims=True))


def prepare_params(params, compute_dtype=jnp.float32):
    """One-time weight prep: transpose, split per-gate, pre-combine biases, lane-pad head."""
    H = params["w_ih"].shape[1]
    O = params["w_out"].shape[0]
    Opad = ((O + 127) // 128) * 128

    w_ih_t = jnp.asarray(params["w_ih"]).T    # (H, 3H), PyTorch gate order [r, z, n]
    w_hh_t = jnp.asarray(params["w_hh"]).T    # (H, 3H)
    w_out_t = jnp.asarray(params["w_out"]).T  # (H, O)

    w_out_pad = jnp.zeros((H, Opad), compute_dtype).at[:, :O].set(w_out_t.astype(compute_dtype))
    # padded logit lanes get a huge negative bias -> exp() == 0 -> log_softmax unaffected
    b_out_pad = jnp.full((1, Opad), -1e30, jnp.float32).at[0, :O].set(
        jnp.asarray(params["b_out"]).astype(jnp.float32))

    return {
        "w_attn_t": jnp.asarray(params["w_attn"]).T.astype(compute_dtype),        # (H, M)
        "b_attn": jnp.asarray(params["b_attn"]).reshape(1, -1).astype(jnp.float32),
        "w_ir": w_ih_t[:, 0:H].astype(compute_dtype),
        "w_iz": w_ih_t[:, H:2 * H].astype(compute_dtype),
        "w_in": w_ih_t[:, 2 * H:3 * H].astype(compute_dtype),
        "w_hr": w_hh_t[:, 0:H].astype(compute_dtype),
        "w_hz": w_hh_t[:, H:2 * H].astype(compute_dtype),
        "w_hn": w_hh_t[:, 2 * H:3 * H].astype(compute_dtype),
        "b_r": (params["b_ih"][0:H] + params["b_hh"][0:H]).reshape(1, H).astype(jnp.float32),
        "b_z": (params["b_ih"][H:2 * H] + params["b_hh"][H:2 * H]).reshape(1, H).astype(jnp.float32),
        "b_in": params["b_ih"][2 * H:3 * H].reshape(1, H).astype(jnp.float32),
        "b_hn": params["b_hh"][2 * H:3 * H].reshape(1, H).astype(jnp.float32),
        "w_out_t": w_out_pad,                                                      # (H, Opad)
        "b_out": b_out_pad,                                                        # (1, Opad)
        "out_size": O,
    }


def memory_decoder_rnn_decode(x_steps, hidden, memory, prepped, compute_dtype=jnp.float32):
    """Fused T-step decode.  x_steps: (T,B,H) per-step inputs, hidden: (1,B,H), memory: (B,M,H).

    Returns (scores: (T, O) log-probs for batch element 0 per step, h_final: (B, H))."""
    T, B, H = x_steps.shape
    M = memory.shape[1]
    Opad = prepped["w_out_t"].shape[1]
    O = prepped["out_size"]

    def const(shape):
        # Constant block index -> the block stays resident in VMEM for the whole grid.
        return pl.BlockSpec(shape, lambda t, _n=len(shape): (0,) * _n)

    grid_spec = pltpu.PrefetchScalarGridSpec(
        num_scalar_prefetch=0,
        grid=(T,),
        in_specs=[
            pl.BlockSpec((1, B, H), lambda t: (t, 0, 0)),   # x for step t
            const((B, H)),                                  # h0
            const((B, M, H)),                               # memory (resident)
            const((H, M)), const((1, M)),                   # attention head
            const((H, H)), const((H, H)), const((H, H)),    # w_ir, w_iz, w_in
            const((H, H)), const((H, H)), const((H, H)),    # w_hr, w_hz, w_hn
            const((1, H)), const((1, H)), const((1, H)), const((1, H)),  # b_r, b_z, b_in, b_hn
            const((H, Opad)), const((1, Opad)),             # output head (lane-padded)
        ],
        out_specs=[
            pl.BlockSpec((1, 1, Opad), lambda t: (t, 0, 0)),  # per-step scores (lane-dense)
            pl.BlockSpec((B, H), lambda t: (0, 0)),           # final hidden (resident)
        ],
        scratch_shapes=[pltpu.VMEM((B, H), jnp.float32)],     # hidden-state carry
    )

    scores_pad, h_final = pl.pallas_call(
        functools.partial(_decoder_kernel, compute_dtype=compute_dtype),
        grid_spec=grid_spec,
        out_shape=(
            jax.ShapeDtypeStruct((T, 1, Opad), jnp.float32),
            jax.ShapeDtypeStruct((B, H), jnp.float32),
        ),
        compiler_params=pltpu.CompilerParams(dimension_semantics=("arbitrary",)),
    )(
        x_steps, hidden[0], memory,
        prepped["w_attn_t"], prepped["b_attn"],
        prepped["w_ir"], prepped["w_iz"], prepped["w_in"],
        prepped["w_hr"], prepped["w_hz"], prepped["w_hn"],
        prepped["b_r"], prepped["b_z"], prepped["b_in"], prepped["b_hn"],
        prepped["w_out_t"], prepped["b_out"],
    )
    return scores_pad[:, 0, :O], h_final


def memory_decoder_rnn_forward(x, hidden, memory, prepped, compute_dtype=jnp.float32):
    """Single-step forward matching the PyTorch module signature.

    x: (B,1,H) batch_first; hidden: (1,B,H); memory: (B,M,H).
    Returns (scores (1,O), new hidden (B,H))."""
    B, S, H = x.shape
    assert S == 1
    x_steps = jnp.transpose(x, (1, 0, 2))   # (1, B, H)
    scores, h_final = memory_decoder_rnn_decode(x_steps, hidden, memory, prepped, compute_dtype)
    return scores, h_final


def _reference_step(x_t, h, memory, params):
    """Pure-JAX single-step reference mirroring the PyTorch forward."""
    H = h.shape[-1]
    logits = h @ params["w_attn"].T + params["b_attn"]
    attn_w = jax.nn.softmax(logits, axis=-1)
    ctx = jnp.einsum("bm,bmh->bh", attn_w, memory)
    gru_in = x_t + ctx
    gi = gru_in @ params["w_ih"].T + params["b_ih"]
    gh = h @ params["w_hh"].T + params["b_hh"]
    r = jax.nn.sigmoid(gi[:, :H] + gh[:, :H])
    z = jax.nn.sigmoid(gi[:, H:2 * H] + gh[:, H:2 * H])
    n = jnp.tanh(gi[:, 2 * H:] + r * gh[:, 2 * H:])
    h_new = (1.0 - z) * n + z * h
    y = h_new[0:1] @ params["w_out"].T + params["b_out"]
    return jax.nn.log_softmax(y, axis=-1), h_new


if __name__ == "__main__":
    # small shapes consistent with the module
    B, H, M, O, T = 2, 32, 8, 16, 4   # batch, hidden(=input) size, mem slots, output size, decode steps

    key = jax.random.PRNGKey(0)
    ks = jax.random.split(key, 12)
    s = 1.0 / jnp.sqrt(H)

    params = {
        "w_attn": jax.random.uniform(ks[0], (M, H), jnp.float32, -s, s),
        "b_attn": jax.random.uniform(ks[1], (M,),   jnp.float32, -s, s),
        "w_ih":   jax.random.uniform(ks[2], (3 * H, H), jnp.float32, -s, s),
        "w_hh":   jax.random.uniform(ks[3], (3 * H, H), jnp.float32, -s, s),
        "b_ih":   jax.random.uniform(ks[4], (3 * H,),   jnp.float32, -s, s),
        "b_hh":   jax.random.uniform(ks[5], (3 * H,),   jnp.float32, -s, s),
        "w_out":  jax.random.uniform(ks[6], (O, H), jnp.float32, -s, s),
        "b_out":  jax.random.uniform(ks[7], (O,),   jnp.float32, -s, s),
    }

    # One-time weight prep (transposes / per-gate split / bias combine / lane padding).
    # On v6e/v7x, pass compute_dtype=jnp.bfloat16 here and below for bf16 MXU operands.
    prepped = prepare_params(params, compute_dtype=jnp.float32)

    x_steps = jax.random.normal(ks[8], (T, B, H), jnp.float32)    # per-step decoder inputs
    hidden0 = jax.random.normal(ks[9], (1, B, H), jnp.float32)    # initial GRU hidden state
    memory = jax.random.normal(ks[10], (B, M, H), jnp.float32)    # external memory

    # Tolerance is loose-ish because the kernel uses the approximate EUP reciprocal for
    # the attention-softmax normalization.
    ATOL = RTOL = 1e-2

    # --- single-step forward (exact module signature) ---
    x_single = jnp.transpose(x_steps[0:1], (1, 0, 2))             # (B, 1, H)
    scores1, h1 = memory_decoder_rnn_forward(x_single, hidden0, memory, prepped)
    scores1 = jax.block_until_ready(scores1)
    ref_scores1, ref_h1 = _reference_step(x_steps[0], hidden0[0], memory, params)
    assert scores1.shape == (1, O)
    assert jnp.allclose(scores1, ref_scores1, atol=ATOL, rtol=RTOL), "single-step scores mismatch"
    assert jnp.allclose(h1, ref_h1, atol=ATOL, rtol=RTOL), "single-step hidden mismatch"

    # --- fused T-step decode (one pallas_call; weights/memory resident, hidden carried) ---
    scores_all, h_final = memory_decoder_rnn_decode(x_steps, hidden0, memory, prepped)
    scores_all = jax.block_until_ready(scores_all)

    h_ref = hidden0[0]
    ref_scores = []
    for t in range(T):
        sc, h_ref = _reference_step(x_steps[t], h_ref, memory, params)
        ref_scores.append(sc)
    ref_scores = jnp.concatenate(ref_scores, axis=0)              # (T, O)

    assert scores_all.shape == (T, O)
    assert jnp.allclose(scores_all, ref_scores, atol=ATOL, rtol=RTOL), "fused decode scores mismatch"
    assert jnp.allclose(h_final, h_ref, atol=ATOL, rtol=RTOL), "fused decode hidden mismatch"

    print("KERNEL_OK")
</pallas_src>

<mosaic_0001>
module attributes {stable_mosaic.version = 11 : i64} {
  func.func @_decoder_kernel(%arg0: i32, %arg1: memref<1x2x32xf32, #tpu.memory_space<vmem>>, %arg2: memref<2x32xf32, #tpu.memory_space<vmem>>, %arg3: memref<2x8x32xf32, #tpu.memory_space<vmem>>, %arg4: memref<32x8xf32, #tpu.memory_space<vmem>>, %arg5: memref<1x8xf32, #tpu.memory_space<vmem>>, %arg6: memref<32x32xf32, #tpu.memory_space<vmem>>, %arg7: memref<32x32xf32, #tpu.memory_space<vmem>>, %arg8: memref<32x32xf32, #tpu.memory_space<vmem>>, %arg9: memref<32x32xf32, #tpu.memory_space<vmem>>, %arg10: memref<32x32xf32, #tpu.memory_space<vmem>>, %arg11: memref<32x32xf32, #tpu.memory_space<vmem>>, %arg12: memref<1x32xf32, #tpu.memory_space<vmem>>, %arg13: memref<1x32xf32, #tpu.memory_space<vmem>>, %arg14: memref<1x32xf32, #tpu.memory_space<vmem>>, %arg15: memref<1x32xf32, #tpu.memory_space<vmem>>, %arg16: memref<32x128xf32, #tpu.memory_space<vmem>>, %arg17: memref<1x128xf32, #tpu.memory_space<vmem>>, %arg18: memref<1x1x128xf32, #tpu.memory_space<vmem>>, %arg19: memref<2x32xf32, #tpu.memory_space<vmem>>, %arg20: memref<2x32xf32, #tpu.memory_space<vmem>>) attributes {dimension_semantics = [#tpu.dimension_semantics<arbitrary>], iteration_bounds = array<i64: 1>, scalar_prefetch = 0 : i64, scratch_operands = 1 : i64, tpu.core_type = #tpu.core_type<tc>, window_params = [{transform_indices = @transform_0, window_bounds = array<i64: 1, 2, 32>}, {pipeline_mode = #tpu.pipeline_mode<synchronous>, transform_indices = @transform_1, window_bounds = array<i64: 2, 32>}, {pipeline_mode = #tpu.pipeline_mode<synchronous>, transform_indices = @transform_2, window_bounds = array<i64: 2, 8, 32>}, {pipeline_mode = #tpu.pipeline_mode<synchronous>, transform_indices = @transform_3, window_bounds = array<i64: 32, 8>}, {pipeline_mode = #tpu.pipeline_mode<synchronous>, transform_indices = @transform_4, window_bounds = array<i64: 1, 8>}, {pipeline_mode = #tpu.pipeline_mode<synchronous>, transform_indices = @transform_5, window_bounds = array<i64: 32, 32>}, {pipeline_mode = #tpu.pipeline_mode<synchronous>, transform_indices = @transform_6, window_bounds = array<i64: 32, 32>}, {pipeline_mode = #tpu.pipeline_mode<synchronous>, transform_indices = @transform_7, window_bounds = array<i64: 32, 32>}, {pipeline_mode = #tpu.pipeline_mode<synchronous>, transform_indices = @transform_8, window_bounds = array<i64: 32, 32>}, {pipeline_mode = #tpu.pipeline_mode<synchronous>, transform_indices = @transform_9, window_bounds = array<i64: 32, 32>}, {pipeline_mode = #tpu.pipeline_mode<synchronous>, transform_indices = @transform_10, window_bounds = array<i64: 32, 32>}, {pipeline_mode = #tpu.pipeline_mode<synchronous>, transform_indices = @transform_11, window_bounds = array<i64: 1, 32>}, {pipeline_mode = #tpu.pipeline_mode<synchronous>, transform_indices = @transform_12, window_bounds = array<i64: 1, 32>}, {pipeline_mode = #tpu.pipeline_mode<synchronous>, transform_indices = @transform_13, window_bounds = array<i64: 1, 32>}, {pipeline_mode = #tpu.pipeline_mode<synchronous>, transform_indices = @transform_14, window_bounds = array<i64: 1, 32>}, {pipeline_mode = #tpu.pipeline_mode<synchronous>, transform_indices = @transform_15, window_bounds = array<i64: 32, 128>}, {pipeline_mode = #tpu.pipeline_mode<synchronous>, transform_indices = @transform_16, window_bounds = array<i64: 1, 128>}, {transform_indices = @transform_17, window_bounds = array<i64: 1, 1, 128>}, {pipeline_mode = #tpu.pipeline_mode<synchronous>, transform_indices = @transform_18, window_bounds = array<i64: 2, 32>}]} {
    %c0_i32 = arith.constant 0 : i32
    %0 = arith.cmpi eq, %arg0, %c0_i32 : i32
    %1 = arith.extui %0 : i1 to i32
    %c0_i32_0 = arith.constant 0 : i32
    %2 = arith.cmpi ne, %1, %c0_i32_0 : i32
    scf.if %2 {
      %c0_58 = arith.constant 0 : index
      %c0_59 = arith.constant 0 : index
      %92 = vector.load %arg2[%c0_58, %c0_59] : memref<2x32xf32, #tpu.memory_space<vmem>>, vector<2x32xf32>
      %c0_60 = arith.constant 0 : index
      %c0_61 = arith.constant 0 : index
      %93 = vector.load %arg20[%c0_60, %c0_61] : memref<2x32xf32, #tpu.memory_space<vmem>>, vector<2x32xf32>
      tpu.vector_store %arg20[%c0_60, %c0_61], %92 {strides = array<i32>} : memref<2x32xf32, #tpu.memory_space<vmem>>, vector<2x32xf32>,
    } else {
    }
    %c0 = arith.constant 0 : index
    %c0_1 = arith.constant 0 : index
    %3 = vector.load %arg20[%c0, %c0_1] : memref<2x32xf32, #tpu.memory_space<vmem>>, vector<2x32xf32>
    %c0_2 = arith.constant 0 : index
    %c0_3 = arith.constant 0 : index
    %c0_4 = arith.constant 0 : index
    %4 = vector.load %arg1[%c0_2, %c0_3, %c0_4] : memref<1x2x32xf32, #tpu.memory_space<vmem>>, vector<1x2x32xf32>
    %5 = vector.shape_cast %4 : vector<1x2x32xf32> to vector<2x32xf32>
    %c0_5 = arith.constant 0 : index
    %c0_6 = arith.constant 0 : index
    %6 = vector.load %arg4[%c0_5, %c0_6] : memref<32x8xf32, #tpu.memory_space<vmem>>, vector<32x8xf32>
    %cst = arith.constant dense<0.000000e+00> : vector<2x8xf32>
    %7 = tpu.matmul %3, %6, %cst {dimension_numbers = #tpu.dot_dimension_numbers<[1], [0], [0], [1], [0, 0, 1, 1], [], []>} : vector<2x32xf32>, vector<32x8xf32>, vector<2x8xf32> -> vector<2x8xf32>
    %c0_7 = arith.constant 0 : index
    %c0_8 = arith.constant 0 : index
    %8 = vector.load %arg5[%c0_7, %c0_8] : memref<1x8xf32, #tpu.memory_space<vmem>>, vector<1x8xf32>
    %9 = vector.broadcast %8 : vector<1x8xf32> to vector<2x8xf32>
    %10 = arith.addf %7, %9 : vector<2x8xf32>
    %cst_9 = arith.constant dense<0xFF800000> : vector<2xf32>
    %11 = vector.multi_reduction <maximumf>, %10, %cst_9 [1] : vector<2x8xf32> to vector<2xf32>
    %12 = vector.shape_cast %11 : vector<2xf32> to vector<2x1xf32>
    %13 = vector.broadcast %12 : vector<2x1xf32> to vector<2x8xf32>
    %14 = arith.subf %10, %13 : vector<2x8xf32>
    %15 = math.exp %14 : vector<2x8xf32>
    %cst_10 = arith.constant dense<0.000000e+00> : vector<2xf32>
    %16 = vector.multi_reduction <add>, %15, %cst_10 [1] : vector<2x8xf32> to vector<2xf32>
    %17 = vector.shape_cast %16 : vector<2xf32> to vector<2x1xf32>
    %18 = tpu.reciprocal %17 {approx = true} : vector<2x1xf32> -> vector<2x1xf32>
    %19 = vector.broadcast %18 : vector<2x1xf32> to vector<2x8xf32>
    %20 = arith.mulf %15, %19 : vector<2x8xf32>
    %21 = vector.shape_cast %20 : vector<2x8xf32> to vector<2x1x8xf32>
    %c0_11 = arith.constant 0 : index
    %c0_12 = arith.constant 0 : index
    %c0_13 = arith.constant 0 : index
    %22 = vector.load %arg3[%c0_11, %c0_12, %c0_13] : memref<2x8x32xf32, #tpu.memory_space<vmem>>, vector<2x8x32xf32>
    "tpu.trace_start"() <{level = 10 : i32, message = "bqm,bmh->bqh"}> : () -> ()
    %cst_14 = arith.constant dense<0.000000e+00> : vector<2x1x32xf32>
    %23 = tpu.matmul %21, %22, %cst_14 {dimension_numbers = #tpu.dot_dimension_numbers<[2], [1], [1], [2], [0, 0, 0, 1, 1, 2], [0], [0]>} : vector<2x1x8xf32>, vector<2x8x32xf32>, vector<2x1x32xf32> -> vector<2x1x32xf32>
    "tpu.trace_stop"() : () -> ()
    %24 = vector.shape_cast %23 : vector<2x1x32xf32> to vector<2x32xf32>
    %25 = arith.addf %5, %24 : vector<2x32xf32>
    %c0_15 = arith.constant 0 : index
    %c0_16 = arith.constant 0 : index
    %26 = vector.load %arg6[%c0_15, %c0_16] : memref<32x32xf32, #tpu.memory_space<vmem>>, vector<32x32xf32>
    %cst_17 = arith.constant dense<0.000000e+00> : vector<2x32xf32>
    %27 = tpu.matmul %25, %26, %cst_17 {dimension_numbers = #tpu.dot_dimension_numbers<[1], [0], [0], [1], [0, 0, 1, 1], [], []>} : vector<2x32xf32>, vector<32x32xf32>, vector<2x32xf32> -> vector<2x32xf32>
    %c0_18 = arith.constant 0 : index
    %c0_19 = arith.constant 0 : index
    %28 = vector.load %arg7[%c0_18, %c0_19] : memref<32x32xf32, #tpu.memory_space<vmem>>, vector<32x32xf32>
    %cst_20 = arith.constant dense<0.000000e+00> : vector<2x32xf32>
    %29 = tpu.matmul %25, %28, %cst_20 {dimension_numbers = #tpu.dot_dimension_numbers<[1], [0], [0], [1], [0, 0, 1, 1], [], []>} : vector<2x32xf32>, vector<32x32xf32>, vector<2x32xf32> -> vector<2x32xf32>
    %c0_21 = arith.constant 0 : index
    %c0_22 = arith.constant 0 : index
    %30 = vector.load %arg8[%c0_21, %c0_22] : memref<32x32xf32, #tpu.memory_space<vmem>>, vector<32x32xf32>
    %cst_23 = arith.constant dense<0.000000e+00> : vector<2x32xf32>
    %31 = tpu.matmul %25, %30, %cst_23 {dimension_numbers = #tpu.dot_dimension_numbers<[1], [0], [0], [1], [0, 0, 1, 1], [], []>} : vector<2x32xf32>, vector<32x32xf32>, vector<2x32xf32> -> vector<2x32xf32>
    %c0_24 = arith.constant 0 : index
    %c0_25 = arith.constant 0 : index
    %32 = vector.load %arg9[%c0_24, %c0_25] : memref<32x32xf32, #tpu.memory_space<vmem>>, vector<32x32xf32>
    %cst_26 = arith.constant dense<0.000000e+00> : vector<2x32xf32>
    %33 = tpu.matmul %3, %32, %cst_26 {dimension_numbers = #tpu.dot_dimension_numbers<[1], [0], [0], [1], [0, 0, 1, 1], [], []>} : vector<2x32xf32>, vector<32x32xf32>, vector<2x32xf32> -> vector<2x32xf32>
    %c0_27 = arith.constant 0 : index
    %c0_28 = arith.constant 0 : index
    %34 = vector.load %arg10[%c0_27, %c0_28] : memref<32x32xf32, #tpu.memory_space<vmem>>, vector<32x32xf32>
    %cst_29 = arith.constant dense<0.000000e+00> : vector<2x32xf32>
    %35 = tpu.matmul %3, %34, %cst_29 {dimension_numbers = #tpu.dot_dimension_numbers<[1], [0], [0], [1], [0, 0, 1, 1], [], []>} : vector<2x32xf32>, vector<32x32xf32>, vector<2x32xf32> -> vector<2x32xf32>
    %c0_30 = arith.constant 0 : index
    %c0_31 = arith.constant 0 : index
    %36 = vector.load %arg11[%c0_30, %c0_31] : memref<32x32xf32, #tpu.memory_space<vmem>>, vector<32x32xf32>
    %cst_32 = arith.constant dense<0.000000e+00> : vector<2x32xf32>
    %37 = tpu.matmul %3, %36, %cst_32 {dimension_numbers = #tpu.dot_dimension_numbers<[1], [0], [0], [1], [0, 0, 1, 1], [], []>} : vector<2x32xf32>, vector<32x32xf32>, vector<2x32xf32> -> vector<2x32xf32>
    %38 = arith.addf %27, %33 : vector<2x32xf32>
    %c0_33 = arith.constant 0 : index
    %c0_34 = arith.constant 0 : index
    %39 = vector.load %arg12[%c0_33, %c0_34] : memref<1x32xf32, #tpu.memory_space<vmem>>, vector<1x32xf32>
    %40 = vector.broadcast %39 : vector<1x32xf32> to vector<2x32xf32>
    %41 = arith.addf %38, %40 : vector<2x32xf32>
    %42 = arith.negf %41 : vector<2x32xf32>
    %43 = math.exp %42 : vector<2x32xf32>
    %cst_35 = arith.constant 1.000000e+00 : f32
    %44 = vector.broadcast %cst_35 : f32 to vector<2x32xf32>
    %45 = arith.addf %44, %43 : vector<2x32xf32>
    %46 = arith.divf %44, %45 : vector<2x32xf32>
    %47 = arith.addf %29, %35 : vector<2x32xf32>
    %c0_36 = arith.constant 0 : index
    %c0_37 = arith.constant 0 : index
    %48 = vector.load %arg13[%c0_36, %c0_37] : memref<1x32xf32, #tpu.memory_space<vmem>>, vector<1x32xf32>
    %49 = vector.broadcast %48 : vector<1x32xf32> to vector<2x32xf32>
    %50 = arith.addf %47, %49 : vector<2x32xf32>
    %51 = arith.negf %50 : vector<2x32xf32>
    %52 = math.exp %51 : vector<2x32xf32>
    %cst_38 = arith.constant 1.000000e+00 : f32
    %53 = vector.broadcast %cst_38 : f32 to vector<2x32xf32>
    %54 = arith.addf %53, %52 : vector<2x32xf32>
    %55 = arith.divf %53, %54 : vector<2x32xf32>
    %c0_39 = arith.constant 0 : index
    %c0_40 = arith.constant 0 : index
    %56 = vector.load %arg14[%c0_39, %c0_40] : memref<1x32xf32, #tpu.memory_space<vmem>>, vector<1x32xf32>
    %57 = vector.broadcast %56 : vector<1x32xf32> to vector<2x32xf32>
    %58 = arith.addf %31, %57 : vector<2x32xf32>
    %c0_41 = arith.constant 0 : index
    %c0_42 = arith.constant 0 : index
    %59 = vector.load %arg15[%c0_41, %c0_42] : memref<1x32xf32, #tpu.memory_space<vmem>>, vector<1x32xf32>
    %60 = vector.broadcast %59 : vector<1x32xf32> to vector<2x32xf32>
    %61 = arith.addf %37, %60 : vector<2x32xf32>
    %62 = arith.mulf %46, %61 : vector<2x32xf32>
    %63 = arith.addf %58, %62 : vector<2x32xf32>
    %64 = math.tanh %63 : vector<2x32xf32>
    %cst_43 = arith.constant 1.000000e+00 : f32
    %65 = vector.broadcast %cst_43 : f32 to vector<2x32xf32>
    %66 = arith.subf %65, %55 : vector<2x32xf32>
    %67 = arith.mulf %66, %64 : vector<2x32xf32>
    %68 = arith.mulf %55, %3 : vector<2x32xf32>
    %69 = arith.addf %67, %68 : vector<2x32xf32>
    %c0_44 = arith.constant 0 : index
    %c0_45 = arith.constant 0 : index
    %70 = vector.load %arg20[%c0_44, %c0_45] : memref<2x32xf32, #tpu.memory_space<vmem>>, vector<2x32xf32>
    tpu.vector_store %arg20[%c0_44, %c0_45], %69 {strides = array<i32>} : memref<2x32xf32, #tpu.memory_space<vmem>>, vector<2x32xf32>,
    %c0_i32_46 = arith.constant 0 : i32
    %71 = arith.cmpi eq, %arg0, %c0_i32_46 : i32
    %72 = arith.extui %71 : i1 to i32
    %c0_i32_47 = arith.constant 0 : i32
    %73 = arith.cmpi ne, %72, %c0_i32_47 : i32
    scf.if %73 {
      %c0_58 = arith.constant 0 : index
      %c0_59 = arith.constant 0 : index
      %92 = vector.load %arg19[%c0_58, %c0_59] : memref<2x32xf32, #tpu.memory_space<vmem>>, vector<2x32xf32>
      tpu.vector_store %arg19[%c0_58, %c0_59], %69 {strides = array<i32>} : memref<2x32xf32, #tpu.memory_space<vmem>>, vector<2x32xf32>,
    } else {
    }
    %74 = vector.extract_strided_slice %69 {offsets = [0, 0], sizes = [1, 32], strides = [1, 1]} : vector<2x32xf32> to vector<1x32xf32>
    %c0_48 = arith.constant 0 : index
    %c0_49 = arith.constant 0 : index
    %75 = vector.load %arg16[%c0_48, %c0_49] : memref<32x128xf32, #tpu.memory_space<vmem>>, vector<32x128xf32>
    %cst_50 = arith.constant dense<0.000000e+00> : vector<1x128xf32>
    %76 = tpu.matmul %74, %75, %cst_50 {dimension_numbers = #tpu.dot_dimension_numbers<[1], [0], [0], [1], [0, 0, 1, 1], [], []>} : vector<1x32xf32>, vector<32x128xf32>, vector<1x128xf32> -> vector<1x128xf32>
    %c0_51 = arith.constant 0 : index
    %c0_52 = arith.constant 0 : index
    %77 = vector.load %arg17[%c0_51, %c0_52] : memref<1x128xf32, #tpu.memory_space<vmem>>, vector<1x128xf32>
    %78 = arith.addf %76, %77 : vector<1x128xf32>
    %cst_53 = arith.constant dense<0xFF800000> : vector<1xf32>
    %79 = vector.multi_reduction <maximumf>, %78, %cst_53 [1] : vector<1x128xf32> to vector<1xf32>
    %80 = vector.shape_cast %79 : vector<1xf32> to vector<1x1xf32>
    %81 = vector.broadcast %80 : vector<1x1xf32> to vector<1x128xf32>
    %82 = arith.subf %78, %81 : vector<1x128xf32>
    %83 = math.exp %82 : vector<1x128xf32>
    %cst_54 = arith.constant dense<0.000000e+00> : vector<1xf32>
    %84 = vector.multi_reduction <add>, %83, %cst_54 [1] : vector<1x128xf32> to vector<1xf32>
    %85 = vector.shape_cast %84 : vector<1xf32> to vector<1x1xf32>
    %86 = math.log %85 : vector<1x1xf32>
    %87 = vector.broadcast %86 : vector<1x1xf32> to vector<1x128xf32>
    %88 = arith.subf %82, %87 : vector<1x128xf32>
    %c0_55 = arith.constant 0 : index
    %c0_56 = arith.constant 0 : index
    %c0_57 = arith.constant 0 : index
    %89 = vector.load %arg18[%c0_55, %c0_56, %c0_57] : memref<1x1x128xf32, #tpu.memory_space<vmem>>, vector<1x1x128xf32>
    %90 = vector.shape_cast %89 : vector<1x1x128xf32> to vector<1x128xf32>
    %91 = vector.shape_cast %88 : vector<1x128xf32> to vector<1x1x128xf32>
    tpu.vector_store %arg18[%c0_55, %c0_56, %c0_57], %91 {strides = array<i32>} : memref<1x1x128xf32, #tpu.memory_space<vmem>>, vector<1x1x128xf32>,
    return
  }
  func.func @transform_0(%arg0: i32) -> (i32, i32, i32) {
    %c0_i32 = arith.constant 0 : i32
    %c0_i32_0 = arith.constant 0 : i32
    %c0_i32_1 = arith.constant 0 : i32
    return %arg0, %c0_i32, %c0_i32_0 : i32, i32, i32
  }
  func.func @transform_1(%arg0: i32) -> (i32, i32) {
    %c0_i32 = arith.constant 0 : i32
    %c0_i32_0 = arith.constant 0 : i32
    %c0_i32_1 = arith.constant 0 : i32
    return %c0_i32, %c0_i32_0 : i32, i32
  }
  func.func @transform_2(%arg0: i32) -> (i32, i32, i32) {
    %c0_i32 = arith.constant 0 : i32
    %c0_i32_0 = arith.constant 0 : i32
    %c0_i32_1 = arith.constant 0 : i32
    %c0_i32_2 = arith.constant 0 : i32
    return %c0_i32, %c0_i32_0, %c0_i32_1 : i32, i32, i32
  }
  func.func @transform_3(%arg0: i32) -> (i32, i32) {
    %c0_i32 = arith.constant 0 : i32
    %c0_i32_0 = arith.constant 0 : i32
    %c0_i32_1 = arith.constant 0 : i32
    return %c0_i32, %c0_i32_0 : i32, i32
  }
  func.func @transform_4(%arg0: i32) -> (i32, i32) {
    %c0_i32 = arith.constant 0 : i32
    %c0_i32_0 = arith.constant 0 : i32
    %c0_i32_1 = arith.constant 0 : i32
    return %c0_i32, %c0_i32_0 : i32, i32
  }
  func.func @transform_5(%arg0: i32) -> (i32, i32) {
    %c0_i32 = arith.constant 0 : i32
    %c0_i32_0 = arith.constant 0 : i32
    %c0_i32_1 = arith.constant 0 : i32
    return %c0_i32, %c0_i32_0 : i32, i32
  }
  func.func @transform_6(%arg0: i32) -> (i32, i32) {
    %c0_i32 = arith.constant 0 : i32
    %c0_i32_0 = arith.constant 0 : i32
    %c0_i32_1 = arith.constant 0 : i32
    return %c0_i32, %c0_i32_0 : i32, i32
  }
  func.func @transform_7(%arg0: i32) -> (i32, i32) {
    %c0_i32 = arith.constant 0 : i32
    %c0_i32_0 = arith.constant 0 : i32
    %c0_i32_1 = arith.constant 0 : i32
    return %c0_i32, %c0_i32_0 : i32, i32
  }
  func.func @transform_8(%arg0: i32) -> (i32, i32) {
    %c0_i32 = arith.constant 0 : i32
    %c0_i32_0 = arith.constant 0 : i32
    %c0_i32_1 = arith.constant 0 : i32
    return %c0_i32, %c0_i32_0 : i32, i32
  }
  func.func @transform_9(%arg0: i32) -> (i32, i32) {
    %c0_i32 = arith.constant 0 : i32
    %c0_i32_0 = arith.constant 0 : i32
    %c0_i32_1 = arith.constant 0 : i32
    return %c0_i32, %c0_i32_0 : i32, i32
  }
  func.func @transform_10(%arg0: i32) -> (i32, i32) {
    %c0_i32 = arith.constant 0 : i32
    %c0_i32_0 = arith.constant 0 : i32
    %c0_i32_1 = arith.constant 0 : i32
    return %c0_i32, %c0_i32_0 : i32, i32
  }
  func.func @transform_11(%arg0: i32) -> (i32, i32) {
    %c0_i32 = arith.constant 0 : i32
    %c0_i32_0 = arith.constant 0 : i32
    %c0_i32_1 = arith.constant 0 : i32
    return %c0_i32, %c0_i32_0 : i32, i32
  }
  func.func @transform_12(%arg0: i32) -> (i32, i32) {
    %c0_i32 = arith.constant 0 : i32
    %c0_i32_0 = arith.constant 0 : i32
    %c0_i32_1 = arith.constant 0 : i32
    return %c0_i32, %c0_i32_0 : i32, i32
  }
  func.func @transform_13(%arg0: i32) -> (i32, i32) {
    %c0_i32 = arith.constant 0 : i32
    %c0_i32_0 = arith.constant 0 : i32
    %c0_i32_1 = arith.constant 0 : i32
    return %c0_i32, %c0_i32_0 : i32, i32
  }
  func.func @transform_14(%arg0: i32) -> (i32, i32) {
    %c0_i32 = arith.constant 0 : i32
    %c0_i32_0 = arith.constant 0 : i32
    %c0_i32_1 = arith.constant 0 : i32
    return %c0_i32, %c0_i32_0 : i32, i32
  }
  func.func @transform_15(%arg0: i32) -> (i32, i32) {
    %c0_i32 = arith.constant 0 : i32
    %c0_i32_0 = arith.constant 0 : i32
    %c0_i32_1 = arith.constant 0 : i32
    return %c0_i32, %c0_i32_0 : i32, i32
  }
  func.func @transform_16(%arg0: i32) -> (i32, i32) {
    %c0_i32 = arith.constant 0 : i32
    %c0_i32_0 = arith.constant 0 : i32
    %c0_i32_1 = arith.constant 0 : i32
    return %c0_i32, %c0_i32_0 : i32, i32
  }
  func.func @transform_17(%arg0: i32) -> (i32, i32, i32) {
    %c0_i32 = arith.constant 0 : i32
    %c0_i32_0 = arith.constant 0 : i32
    %c0_i32_1 = arith.constant 0 : i32
    return %arg0, %c0_i32, %c0_i32_0 : i32, i32, i32
  }
  func.func @transform_18(%arg0: i32) -> (i32, i32) {
    %c0_i32 = arith.constant 0 : i32
    %c0_i32_0 = arith.constant 0 : i32
    %c0_i32_1 = arith.constant 0 : i32
    return %c0_i32, %c0_i32_0 : i32, i32
  }
}

</mosaic_0001>

<bundles_post_ra>
// kernel: tpu_custom_call.1
= control target key start
LH: loop header
LB: loop body
LE: loop exit
PB: predicated region body
PF: predicated region fallthrough
CT: control target
= control target key end

     0   :  { %s2111_s0 = inlined_call_operand.hbm [shape: f32[1,2,32], index: 0, kind: input, shape index: {}]   ;;  %s2112_s1 = inlined_call_operand.hbm [shape: f32[2,32], index: 1, kind: input, shape index: {}]   ;;  %s2113_s2 = inlined_call_operand.hbm [shape: f32[2,8,32], index: 2, kind: input, shape index: {}]   ;;  %s2114_s3 = inlined_call_operand.vmem [shape: f32[32,8], index: 3, kind: input, shape index: {}]   ;;  %s2115_s4 = inlined_call_operand.hbm [shape: f32[1,8], index: 4, kind: input, shape index: {}]   ;;  %s2116_s5 = inlined_call_operand.vmem [shape: f32[32,32], index: 5, kind: input, shape index: {}]   ;;  %s2117_s6 = inlined_call_operand.hbm [shape: f32[32,32], index: 6, kind: input, shape index: {}]   ;;  %s2118_s7 = inlined_call_operand.vmem [shape: f32[32,32], index: 7, kind: input, shape index: {}]   ;;  %s2119_s8 = inlined_call_operand.hbm [shape: f32[32,32], index: 8, kind: input, shape index: {}]   ;;  %s2120_s9 = inlined_call_operand.hbm [shape: f32[32,32], index: 9, kind: input, shape index: {}]   ;;  %s2121_s10 = inlined_call_operand.hbm [shape: f32[32,32], index: 10, kind: input, shape index: {}]   ;;  %s2122_s11 = inlined_call_operand.hbm [shape: f32[1,32], index: 11, kind: input, shape index: {}]   ;;  %s2123_s12 = inlined_call_operand.hbm [shape: f32[1,32], index: 12, kind: input, shape index: {}]   ;;  %s2124_s13 = inlined_call_operand.hbm [shape: f32[1,32], index: 13, kind: input, shape index: {}]   ;;  %s2125_s14 = inlined_call_operand.hbm [shape: f32[1,32], index: 14, kind: input, shape index: {}]   ;;  %s2126_s15 = inlined_call_operand.vmem [shape: f32[32,128], index: 15, kind: input, shape index: {}]   ;;  %s2127_s16 = inlined_call_operand.vmem [shape: f32[1,128], index: 16, kind: input, shape index: {}]   ;;  %s2128_s17 = inlined_call_operand.hbm [shape: f32[1,1,128], index: 17, kind: output, shape index: {0}]   ;;  %s2129_s18 = inlined_call_operand.hbm [shape: f32[2,32], index: 18, kind: output, shape index: {1}]  }
   0x1   :  { %2133 = sst [smem:[#allocation35_spill]] %s2111_s0 }
   0x2   :  { %2134 = sst [smem:[#allocation36_spill]] %s2112_s1 }
   0x3   :  { %2135 = sst [smem:[#allocation37_spill]] %s2113_s2 }
   0x4   :  { %24 = vsyncpa [#allocation4], 0 }
   0x5   :  { %25 = vsyncpa [#allocation7], 0 }
   0x6   :  { %26 = vsyncpa [#allocation10], 0 }
   0x7   :  { %27 = vsyncpa [#allocation13], 0 }
   0x8   :  { %28 = vsyncpa [#allocation16], 0 }
   0x9   :  { %29 = vsyncpa [#allocation19], 0 }
   0xa   :  { %30 = vsyncpa [#allocation22], 0 }
   0xb   :  { %31 = vsyncpa [#allocation5], 0 }
   0xc   :  { %32 = vsyncpa [#allocation25], 0  ;;  %s1692_s27 = smov [#allocation6]   ;;  %s1693_s29 = smov [#allocation9]  }
   0xd   :  { %s49_s28 = sshll.u32 %s1692_s27, 4  ;;  %s73_s30 = sshll.u32 %s1693_s29, 4  ;;  %s50_s28 = int_to_ptr.vmem [resolvable:$true] %s49_s28  ;;  %s74_s30 = int_to_ptr.vmem [resolvable:$true] %s73_s30 }
   0xe   :  { %s2136_s1 = sld [smem:[#allocation36_spill]] }
  0x14   :  { %s1366_s20 = scalar_lea.hbm %s2136_s1, 32 }
  0x15   :  { %p1367_p0 = scmp.ne.s32.totalorder %s2136_s1, %s1366_s20  ;;  %p1370_p1 = scmp.lt.u32.totalorder %s1366_s20, %s2136_s1 }
  0x17   :  { %p1372_p2 = pnand %p1370_p1, %p1367_p0 }
  0x19   :  { %1375 = shalt.err (!%p1372_p2)
}
  0x1a   :  { %s1376_s24 = scalar_lea.vmem %s50_s28, 32  ;;  %p1381_p4 = scmp.lt.s32.totalorder %s50_s28, %s50_s28 }
  0x1b   :  { %p1377_p3 = scmp.ne.s32.totalorder %s50_s28, %s1376_s24  ;;  %p1382_p5 = scmp.lt.s32.totalorder %s1376_s24, %s1376_s24 }
  0x1d   :  { %p1383_p6 = por %p1382_p5, %p1381_p4 }
  0x1f   :  { %p1384_p7 = pnand %p1383_p6, %p1377_p3 }
  0x21   :  { %1387 = shalt.err (!%p1384_p7)
}
  0x22   :  { %52 = dma.hbm_to_vmem [thread:$0]  %s2136_s1, 32, %s50_s28, [#allocation7]  }
  0x23   :  { %s1388_s0 = scalar_lea.hbm %s2115_s4, 16 }
  0x24   :  { %p1389_p8 = scmp.ne.s32.totalorder %s2115_s4, %s1388_s0  ;;  %p1392_p9 = scmp.lt.u32.totalorder %s1388_s0, %s2115_s4 }
  0x26   :  { %p1394_p10 = pnand %p1392_p9, %p1389_p8 }
  0x28   :  { %1397 = shalt.err (!%p1394_p10)
}
  0x29   :  { %s1398_s2 = scalar_lea.vmem %s74_s30, 16  ;;  %s1402_s23 = scalar_lea.vmem %s74_s30, 32 }
  0x2a   :  { %p1399_p11 = scmp.ne.s32.totalorder %s74_s30, %s1398_s2  ;;  %p1403_p12 = scmp.lt.s32.totalorder %s74_s30, %s74_s30 }
  0x2b   :  { %p1404_p13 = scmp.lt.s32.totalorder %s1402_s23, %s1398_s2 }
  0x2d   :  { %p1405_p0 = por %p1404_p13, %p1403_p12 }
  0x2f   :  { %p1406_p1 = pnand %p1405_p0, %p1399_p11 }
  0x31   :  { %1409 = shalt.err (!%p1406_p1)
}
  0x32   :  { %76 = dma.hbm_to_vmem [thread:$0]  %s2115_s4, 16, %s74_s30, [#allocation10]  }
  0x33   :  { %s1694_s24 = smov [#allocation12]   ;;  %s1695_s26 = smov [#allocation15]  }
  0x34   :  { %s98_s25 = sshll.u32 %s1694_s24, 4  ;;  %s122_s27 = sshll.u32 %s1695_s26, 4  ;;  %s99_s25 = int_to_ptr.vmem [resolvable:$true] %s98_s25  ;;  %s1831_s27 = int_to_ptr.vmem [resolvable:$true] %s122_s27 }
  0x35   :  { %s1410_s19 = scalar_lea.hbm %s2119_s8, 512 }
  0x36   :  { %p1411_p2 = scmp.ne.s32.totalorder %s2119_s8, %s1410_s19  ;;  %p1414_p3 = scmp.lt.u32.totalorder %s1410_s19, %s2119_s8 }
  0x38   :  { %p1416_p4 = pnand %p1414_p3, %p1411_p2 }
  0x3a   :  { %1419 = shalt.err (!%p1416_p4)
}
  0x3b   :  { %s1420_s4 = scalar_lea.vmem %s99_s25, 512  ;;  %p1425_p6 = scmp.lt.s32.totalorder %s99_s25, %s99_s25 }
  0x3c   :  { %p1421_p5 = scmp.ne.s32.totalorder %s99_s25, %s1420_s4  ;;  %p1426_p7 = scmp.lt.s32.totalorder %s1420_s4, %s1420_s4 }
  0x3e   :  { %p1427_p8 = por %p1426_p7, %p1425_p6 }
  0x40   :  { %p1428_p9 = pnand %p1427_p8, %p1421_p5 }
  0x42   :  { %1431 = shalt.err (!%p1428_p9)
}
  0x43   :  { %s1696_s30 = smov 128   ;;  %s1697_s23 = smov 8  }
  0x44   :  { %104 = dma.hbm_to_vmem [thread:$0]  %s2119_s8, 512, %s99_s25, [#allocation13], %s1696_s30, %s1696_s30, %s1697_s23  }
  0x45   :  { %s1432_s29 = scalar_lea.hbm %s2121_s10, 512 }
  0x46   :  { %p1433_p10 = scmp.ne.s32.totalorder %s2121_s10, %s1432_s29  ;;  %p1436_p11 = scmp.lt.u32.totalorder %s1432_s29, %s2121_s10 }
  0x48   :  { %p1438_p12 = pnand %p1436_p11, %p1433_p10 }
  0x4a   :  { %1441 = shalt.err (!%p1438_p12)
}
  0x4b   :  { %s1442_s22 = scalar_lea.vmem %s1831_s27, 512  ;;  %p1447_p0 = scmp.lt.s32.totalorder %s1831_s27, %s1831_s27 }
  0x4c   :  { %p1443_p13 = scmp.ne.s32.totalorder %s1831_s27, %s1442_s22  ;;  %p1448_p1 = scmp.lt.s32.totalorder %s1442_s22, %s1442_s22 }
  0x4e   :  { %p1449_p2 = por %p1448_p1, %p1447_p0 }
  0x50   :  { %p1450_p3 = pnand %p1449_p2, %p1443_p13 }
  0x52   :  { %1453 = shalt.err (!%p1450_p3)
}
  0x53   :  { %128 = dma.hbm_to_vmem [thread:$0]  %s2121_s10, 512, %s1831_s27, [#allocation16], %s1696_s30, %s1696_s30, %s1697_s23  }
  0x54   :  { %s1698_s2 = smov [#allocation18]   ;;  %s1699_s28 = smov [#allocation3]  }
  0x55   :  { %s145_s4 = sshll.u32 %s1698_s2, 4  ;;  %s39_s1 = sshll.u32 %s1699_s28, 4  ;;  %s146_s4 = int_to_ptr.vmem [resolvable:$true] %s145_s4  ;;  %s40_s1 = int_to_ptr.vmem [resolvable:$true] %s39_s1 }
  0x56   :  { %s1454_s29 = scalar_lea.hbm %s2123_s12, 16 }
  0x57   :  { %p1455_p4 = scmp.ne.s32.totalorder %s2123_s12, %s1454_s29  ;;  %p1458_p5 = scmp.lt.u32.totalorder %s1454_s29, %s2123_s12 }
  0x59   :  { %p1460_p6 = pnand %p1458_p5, %p1455_p4 }
  0x5b   :  { %1463 = shalt.err (!%p1460_p6)
}
  0x5c   :  { %s1464_s10 = scalar_lea.vmem %s146_s4, 16  ;;  %s1468_s27 = scalar_lea.vmem %s146_s4, 32 }
  0x5d   :  { %p1465_p7 = scmp.ne.s32.totalorder %s146_s4, %s1464_s10  ;;  %p1469_p8 = scmp.lt.s32.totalorder %s146_s4, %s146_s4 }
  0x5e   :  { %p1470_p9 = scmp.lt.s32.totalorder %s1468_s27, %s1464_s10 }
  0x60   :  { %p1471_p10 = por %p1470_p9, %p1469_p8 }
  0x62   :  { %p1472_p11 = pnand %p1471_p10, %p1465_p7 }
  0x64   :  { %1475 = shalt.err (!%p1472_p11)
}
  0x65   :  { %148 = dma.hbm_to_vmem [thread:$0]  %s2123_s12, 16, %s146_s4, [#allocation19]  }
  0x66   :  { %s2137_s28 = sld [smem:[#allocation35_spill]] }
  0x6c   :  { %s1476_s24 = scalar_lea.hbm %s2137_s28, 32 }
  0x6d   :  { %p1477_p12 = scmp.ne.s32.totalorder %s2137_s28, %s1476_s24  ;;  %p1480_p13 = scmp.lt.u32.totalorder %s1476_s24, %s2137_s28 }
  0x6f   :  { %p1482_p0 = pnand %p1480_p13, %p1477_p12 }
  0x71   :  { %1485 = shalt.err (!%p1482_p0)
}
  0x72   :  { %s1486_s21 = scalar_lea.vmem %s40_s1, 32  ;;  %p1491_p2 = scmp.lt.s32.totalorder %s40_s1, %s40_s1 }
  0x73   :  { %p1487_p1 = scmp.ne.s32.totalorder %s40_s1, %s1486_s21  ;;  %p1492_p3 = scmp.lt.s32.totalorder %s1486_s21, %s1486_s21 }
  0x75   :  { %p1493_p4 = por %p1492_p3, %p1491_p2 }
  0x77   :  { %p1494_p5 = pnand %p1493_p4, %p1487_p1 }
  0x79   :  { %1497 = shalt.err (!%p1494_p5)
}
  0x7a   :  { %42 = dma.hbm_to_vmem [thread:$0]  %s2137_s28, 32, %s40_s1, [#allocation4]  }
  0x7b   :  { %s1700_s20 = smov [#allocation8]   ;;  %s1701_s27 = smov [#allocation11]  }
  0x7c   :  { %s58_s10 = sshll.u32 %s1700_s20, 4  ;;  %s84_s22 = sshll.u32 %s1701_s27, 4  ;;  %s59_s10 = int_to_ptr.vmem [resolvable:$true] %s58_s10  ;;  %s1892_s22 = int_to_ptr.vmem [resolvable:$true] %s84_s22 }
  0x7d   :  { %s2138_s2 = sld [smem:[#allocation37_spill]] }
  0x83   :  { %s1498_s24 = scalar_lea.hbm %s2138_s2, 256 }
  0x84   :  { %p1499_p6 = scmp.ne.s32.totalorder %s2138_s2, %s1498_s24  ;;  %p1502_p7 = scmp.lt.u32.totalorder %s1498_s24, %s2138_s2 }
  0x86   :  { %p1504_p8 = pnand %p1502_p7, %p1499_p6 }
  0x88   :  { %1507 = shalt.err (!%p1504_p8)
}
  0x89   :  { %s1508_s1 = scalar_lea.vmem %s59_s10, 256  ;;  %p1513_p10 = scmp.lt.s32.totalorder %s59_s10, %s59_s10 }
  0x8a   :  { %p1509_p9 = scmp.ne.s32.totalorder %s59_s10, %s1508_s1  ;;  %p1514_p11 = scmp.lt.s32.totalorder %s1508_s1, %s1508_s1 }
  0x8c   :  { %p1515_p12 = por %p1514_p11, %p1513_p10 }
  0x8e   :  { %p1516_p13 = pnand %p1515_p12, %p1509_p9 }
  0x90   :  { %1519 = shalt.err (!%p1516_p13)
}
  0x91   :  { %64 = dma.hbm_to_vmem [thread:$0]  %s2138_s2, 256, %s59_s10, [#allocation7], %s1696_s30, %s1696_s30, %s1697_s23  }
  0x92   :  { %s1520_s20 = scalar_lea.hbm %s2117_s6, 512 }
  0x93   :  { %p1521_p0 = scmp.ne.s32.totalorder %s2117_s6, %s1520_s20  ;;  %p1524_p1 = scmp.lt.u32.totalorder %s1520_s20, %s2117_s6 }
  0x95   :  { %p1526_p2 = pnand %p1524_p1, %p1521_p0 }
  0x97   :  { %1529 = shalt.err (!%p1526_p2)
}
  0x98   :  { %s1530_s26 = scalar_lea.vmem %s1892_s22, 512  ;;  %p1535_p4 = scmp.lt.s32.totalorder %s1892_s22, %s1892_s22 }
  0x99   :  { %p1531_p3 = scmp.ne.s32.totalorder %s1892_s22, %s1530_s26  ;;  %p1536_p5 = scmp.lt.s32.totalorder %s1530_s26, %s1530_s26 }
  0x9b   :  { %p1537_p6 = por %p1536_p5, %p1535_p4 }
  0x9d   :  { %p1538_p7 = pnand %p1537_p6, %p1531_p3 }
  0x9f   :  { %1541 = shalt.err (!%p1538_p7)
}
  0xa0   :  { %90 = dma.hbm_to_vmem [thread:$0]  %s2117_s6, 512, %s1892_s22, [#allocation10], %s1696_s30, %s1696_s30, %s1697_s23  }
  0xa1   :  { %s1702_s29 = smov [#allocation14]   ;;  %s1703_s19 = smov [#allocation17]  }
  0xa2   :  { %s110_s0 = sshll.u32 %s1702_s29, 4  ;;  %s135_s1 = sshll.u32 %s1703_s19, 4  ;;  %s111_s0 = int_to_ptr.vmem [resolvable:$true] %s110_s0  ;;  %s136_s1 = int_to_ptr.vmem [resolvable:$true] %s135_s1 }
  0xa3   :  { %s1542_s12 = scalar_lea.hbm %s2120_s9, 512 }
  0xa4   :  { %p1543_p8 = scmp.ne.s32.totalorder %s2120_s9, %s1542_s12  ;;  %p1546_p9 = scmp.lt.u32.totalorder %s1542_s12, %s2120_s9 }
  0xa6   :  { %p1548_p10 = pnand %p1546_p9, %p1543_p8 }
  0xa8   :  { %1551 = shalt.err (!%p1548_p10)
}
  0xa9   :  { %s1552_s6 = scalar_lea.vmem %s111_s0, 512  ;;  %p1557_p12 = scmp.lt.s32.totalorder %s111_s0, %s111_s0 }
  0xaa   :  { %p1553_p11 = scmp.ne.s32.totalorder %s111_s0, %s1552_s6  ;;  %p1558_p13 = scmp.lt.s32.totalorder %s1552_s6, %s1552_s6 }
  0xac   :  { %p1559_p0 = por %p1558_p13, %p1557_p12 }
  0xae   :  { %p1560_p1 = pnand %p1559_p0, %p1553_p11 }
  0xb0   :  { %1563 = shalt.err (!%p1560_p1)
}
  0xb1   :  { %116 = dma.hbm_to_vmem [thread:$0]  %s2120_s9, 512, %s111_s0, [#allocation13], %s1696_s30, %s1696_s30, %s1697_s23  }
  0xb2   :  { %s1564_s10 = scalar_lea.hbm %s2122_s11, 16 }
  0xb3   :  { %p1565_p2 = scmp.ne.s32.totalorder %s2122_s11, %s1564_s10  ;;  %p1568_p3 = scmp.lt.u32.totalorder %s1564_s10, %s2122_s11 }
  0xb5   :  { %p1570_p4 = pnand %p1568_p3, %p1565_p2 }
  0xb7   :  { %1573 = shalt.err (!%p1570_p4)
}
  0xb8   :  { %s1574_s21 = scalar_lea.vmem %s136_s1, 16  ;;  %s1578_s12 = scalar_lea.vmem %s136_s1, 32 }
  0xb9   :  { %p1575_p5 = scmp.ne.s32.totalorder %s136_s1, %s1574_s21  ;;  %p1579_p6 = scmp.lt.s32.totalorder %s136_s1, %s136_s1 }
  0xba   :  { %p1580_p7 = scmp.lt.s32.totalorder %s1578_s12, %s1574_s21 }
  0xbc   :  { %p1581_p8 = por %p1580_p7, %p1579_p6 }
  0xbe   :  { %p1582_p9 = pnand %p1581_p8, %p1575_p5 }
  0xc0   :  { %1585 = shalt.err (!%p1582_p9)
}
  0xc1   :  { %138 = dma.hbm_to_vmem [thread:$0]  %s2122_s11, 16, %s136_s1, [#allocation16]  }
  0xc2   :  { %s1704_s23 = smov [#allocation20]   ;;  %s1705_s4 = smov [#allocation21]  }
  0xc3   :  { %s155_s0 = sshll.u32 %s1704_s23, 4  ;;  %s165_s20 = sshll.u32 %s1705_s4, 4  ;;  %s156_s0 = int_to_ptr.vmem [resolvable:$true] %s155_s0  ;;  %s166_s20 = int_to_ptr.vmem [resolvable:$true] %s165_s20 }
  0xc4   :  { %s1586_s6 = scalar_lea.hbm %s2124_s13, 16 }
  0xc5   :  { %p1587_p10 = scmp.ne.s32.totalorder %s2124_s13, %s1586_s6  ;;  %p1590_p11 = scmp.lt.u32.totalorder %s1586_s6, %s2124_s13 }
  0xc7   :  { %p1592_p12 = pnand %p1590_p11, %p1587_p10 }
  0xc9   :  { %1595 = shalt.err (!%p1592_p12)
}
  0xca   :  { %s1596_s11 = scalar_lea.vmem %s156_s0, 16  ;;  %s1600_s1 = scalar_lea.vmem %s156_s0, 32 }
  0xcb   :  { %p1597_p13 = scmp.ne.s32.totalorder %s156_s0, %s1596_s11  ;;  %p1601_p0 = scmp.lt.s32.totalorder %s156_s0, %s156_s0 }
  0xcc   :  { %p1602_p1 = scmp.lt.s32.totalorder %s1600_s1, %s1596_s11 }
  0xce   :  { %p1603_p2 = por %p1602_p1, %p1601_p0 }
  0xd0   :  { %p1604_p3 = pnand %p1603_p2, %p1597_p13 }
  0xd2   :  { %1607 = shalt.err (!%p1604_p3)
}
  0xd3   :  { %158 = dma.hbm_to_vmem [thread:$0]  %s2124_s13, 16, %s156_s0, [#allocation19]  }
  0xd4   :  { %s1608_s28 = scalar_lea.hbm %s2125_s14, 16 }
  0xd5   :  { %p1609_p4 = scmp.ne.s32.totalorder %s2125_s14, %s1608_s28  ;;  %p1612_p5 = scmp.lt.u32.totalorder %s1608_s28, %s2125_s14 }
  0xd7   :  { %p1614_p6 = pnand %p1612_p5, %p1609_p4 }
  0xd9   :  { %1617 = shalt.err (!%p1614_p6)
}
  0xda   :  { %s1618_s23 = scalar_lea.vmem %s166_s20, 16  ;;  %s1622_s4 = scalar_lea.vmem %s166_s20, 32 }
  0xdb   :  { %p1619_p7 = scmp.ne.s32.totalorder %s166_s20, %s1618_s23  ;;  %p1623_p8 = scmp.lt.s32.totalorder %s166_s20, %s166_s20 }
  0xdc   :  { %p1624_p9 = scmp.lt.s32.totalorder %s1622_s4, %s1618_s23 }
  0xde   :  { %p1625_p10 = por %p1624_p9, %p1623_p8 }
  0xe0   :  { %p1626_p11 = pnand %p1625_p10, %p1619_p7 }
  0xe2   :  { %1629 = shalt.err (!%p1626_p11)
}
  0xe3   :  { %168 = dma.hbm_to_vmem [thread:$0]  %s2125_s14, 16, %s166_s20, [#allocation22]  }
  0xe4   :  { %1674 = dma.done.wait [#allocation4], 32  }
  0xe5   :  { %1675 = vsyncadd [#allocation4], 4294967264 }
  0xe6   :  { %1676 = dma.done.wait [#allocation7], 288  }
  0xe7   :  { %1677 = vsyncadd [#allocation7], 4294967008 }
  0xe8   :  { %1678 = dma.done.wait [#allocation10], 528  }
  0xe9   :  { %1679 = vsyncadd [#allocation10], 4294966768 }
  0xea   :  { %1680 = dma.done.wait [#allocation13], 1024  }
  0xeb   :  { %1681 = vsyncadd [#allocation13], 4294966272 }
  0xec   :  { %1682 = dma.done.wait [#allocation16], 528  }
  0xed   :  { %1683 = vsyncadd [#allocation16], 4294966768 }
  0xee   :  { %1684 = dma.done.wait [#allocation19], 32  }
  0xef   :  { %1685 = vsyncadd [#allocation19], 4294967264 }
  0xf0   :  { %1686 = dma.done.wait [#allocation22], 16  }
  0xf1   :  { %1687 = vsyncadd [#allocation22], 4294967280  ;;  %v1706_v0 = vmov 0.0|0.0   ;;  %vm1707_vm0 = vmmov 0   ;;  %v1708_v1 = vmov 0.0   ;;  %vm214_vm1 = vcmask 254976  }
  0xf2   :  { %1280 = vmatprep.subr.bf16.mxu0 %v1706_v0  ;;  %1190 = vmatprep.mubr.msk.f32.mxu0 %vm1707_vm0, %v1708_v1  ;;  %v218_v2 = vld [vmem:[%s2114_s3] sm:$0xff]  ;;  %v219_v3 = vld [vmem:[%s2114_s3 + $0x8] sm:$0xff]  ;;  %v220_v4 = vld [vmem:[%s2114_s3 + $0x10] sm:$0xff]  ;;  %vm229_vm2 = vcmask 261120   ;;  %vm303_vm3 = vcmask 58368   ;;  %v319_v25 = vlaneseq  ;;  %vm340_vm4 = vcmask 64512  }
  0xf3   :  { %1198 = vmatprep.subr.mxu1 %v1708_v1  ;;  %1200 = vmatprep.mubr.msk.f32.mxu1 %vm1707_vm0, %v1708_v1  ;;  %v1281_v5 = vpack.c.bf16 %v219_v3, %v218_v2  ;;  %v221_v6 = vld [vmem:[%s2114_s3 + $0x18] sm:$0xff]  ;;  %v213_v7 = vld [vmem:[#allocation6] sm:$0x3]  ;;  %v1121_v10 = vld [vmem:[#allocation9] ss:$0 sm:$0xff]  ;;  %vm488_vm5 = vcmask 1041409  }
  0xf4   :  { %215 = vst.msk [vmem:[#allocation2] sm:$0x3] %vm214_vm1, %v213_v7  ;;  %v1284_v8 = vpack.c.bf16 %v221_v6, %v220_v4  ;;  %v338_v20 = vld [vmem:[#allocation8] sm:$0xff]  ;;  %v339_v21 = vld [vmem:[#allocation8 + $0x8] sm:$0xff]  ;;  %v1709_v23 = vmov 1966171168  }
  0xf5   :  { %1282 = vmatpush3.bf16.msra.mxu0 %v1281_v5  ;;  %1199 = vmatpush3.msra.mxu1 %v339_v21  ;;  %v317_v24 = vunpack.c.l.s4 %v1709_v23  ;;  %v320_v27 = vshrl.u32 %v319_v25, 7  ;;  %v578_v31 = vld [vmem:[#allocation14] sm:$0xff]  ;;  %v579_v32 = vld [vmem:[#allocation14 + $0x8] sm:$0xff]  ;;  %v580_v39 = vld [vmem:[#allocation14 + $0x10] sm:$0xff]  ;;  %vm1072_vm6 = vcmask 1040384   ;;  %s1710_s25 = smov [#allocation24]  }
  0xf6   :  { %1283 = vmatprep.subr.bf16.mxu0 %v1706_v0  ;;  %1286 = vmatprep.subr.bf16.mxu1 %v1706_v0  ;;  %v504_v34 = vld [vmem:[#allocation12] sm:$0xff]  ;;  %v505_v35 = vld [vmem:[#allocation12 + $0x8] sm:$0xff]  ;;  %v1293_v36 = vpack.c.bf16 %v579_v32, %v578_v31  ;;  %v581_v40 = vld [vmem:[#allocation14 + $0x18] sm:$0xff]  ;;  %s1102_s24 = sshll.u32 %s1710_s25, 4  ;;  %s1103_s24 = int_to_ptr.vmem [resolvable:$true] %s1102_s24 }
  0xf7   :  { %v318_v26 = vunpack.c.0.s8 %v317_v24  ;;  %v1287_v41 = vpack.c.bf16 %v505_v35, %v504_v34  ;;  %v506_v43 = vld [vmem:[#allocation12 + $0x10] sm:$0xff]  ;;  %v507_v44 = vld [vmem:[#allocation12 + $0x18] sm:$0xff]  ;;  %v1296_v45 = vpack.c.bf16 %v581_v40, %v580_v39  ;;  %v492_v47 = vld [vmem:[%s2116_s5] sm:$0xff]  ;;  %s1630_s3 = scalar_lea.vmem %s1103_s24, 32  ;;  %p1635_p13 = scmp.lt.s32.totalorder %s1103_s24, %s1103_s24 }
  0xf8   :  { %v1290_v46 = vpack.c.bf16 %v507_v44, %v506_v43  ;;  %v493_v48 = vld [vmem:[%s2116_s5 + $0x8] sm:$0xff]  ;;  %v496_v50 = vld [vmem:[#allocation11] sm:$0xff]  ;;  %v497_v51 = vld [vmem:[#allocation11 + $0x8] sm:$0xff]  ;;  %p1631_p12 = scmp.ne.s32.totalorder %s1103_s24, %s1630_s3  ;;  %p1636_p0 = scmp.lt.s32.totalorder %s1630_s3, %s1630_s3 }
  0xf9   :  { %1285 = vmatpush3.bf16.msra.mxu0 %v1284_v8  ;;  %v321_v28 = vsub.s32 %v318_v26, %v320_v27  ;;  %v1299_v49 = vpack.c.bf16 %v493_v48, %v492_v47  ;;  %v1305_v52 = vpack.c.bf16 %v497_v51, %v496_v50  ;;  %v494_v53 = vld [vmem:[%s2116_s5 + $0x10] sm:$0xff]  ;;  %v495_v54 = vld [vmem:[%s2116_s5 + $0x18] sm:$0xff]  ;;  %v498_v56 = vld [vmem:[#allocation11 + $0x10] sm:$0xff] }
  0xfa   :  { %1193 = vmatprep.subr.mxu0 %v1708_v1  ;;  %v1302_v55 = vpack.c.bf16 %v495_v54, %v494_v53  ;;  %v499_v57 = vld [vmem:[#allocation11 + $0x18] sm:$0xff]  ;;  %v500_v62 = vld [vmem:[%s2118_s7] sm:$0xff]  ;;  %v501_v63 = vld [vmem:[%s2118_s7 + $0x8] sm:$0xff]  ;;  %p1637_p1 = por %p1636_p0, %p1635_p13 }
  0xfb   :  { %v2001_v9 = vld [vmem:[#allocation2] sm:$0x3]  ;;  %v1308_v58 = vpack.c.bf16 %v499_v57, %v498_v56  ;;  %v217_v2 = vld [vmem:[#allocation3] sm:$0x3]  ;;  %v652_v5 = vld [vmem:[#allocation15] sm:$0xff]  ;;  %v1311_v8 = vpack.c.bf16 %v501_v63, %v500_v62 }
  0xfc   :  { %1191 = vmatmul.mubr.msk.f32.vlgmr.msra.gmra.mrb[0].mxu0 %vm229_vm2, %v2001_v9  ;;  %v653_v6 = vld [vmem:[#allocation15 + $0x8] sm:$0xff]  ;;  %v995_v23 = vld [vmem:[%s2126_s15 + $0x8] sm:$0xff]  ;;  %v996_v24 = vld [vmem:[%s2126_s15 + $0x10] sm:$0xff]  ;;  %p1638_p2 = pnand %p1637_p1, %p1631_p12 }
  0xfd   :  { %1195 = vmatprep.mubr.msk.f32.mxu0 %vm1707_vm0, %v1708_v1  ;;  %1194 = vmatpush3.msra.mxu0 %v338_v20  ;;  %v997_v26 = vld [vmem:[%s2126_s15 + $0x18] sm:$0xff] }
  0xfe   :  { %1292 = vmatprep.subr.bf16.mxu0 %v1706_v0  ;;  %v1326_v27 = vpack.c.bf16 %v997_v26, %v996_v24  ;;  %v1131_v35 = vld [vmem:[#allocation18] ss:$0 sm:$0xff]  ;;  %v1133_v48 = vld [vmem:[#allocation20] ss:$0 sm:$0xff] }
 0x1cf   :  { %v299_v11 = vpop.f32.mrb[0].mxu0 }
 0x1d0   :  { %v300_v12 = vadd.f32 %v1121_v10, %v299_v11  ;;  %v1192_v13 = vpop.f32.mrb[1].mxu0  ;;  %v502_v11 = vld [vmem:[%s2118_s7 + $0x10] sm:$0xff] }
 0x1d1   :  { %v1317_v13 = vpack.c.bf16 %v653_v6, %v652_v5 }
 0x1d2   :  { %v304_v14 = vsel %vm303_vm3, %v300_v12, -inf }
 0x1d3   :  { %305 = vmax.xlane.f32.xlu0 %v304_v14  ;;  %v654_v14 = vld [vmem:[#allocation15 + $0x10] sm:$0xff] }
 0x260   :  { %v306_v15 = vpop.xlane.xlu0 %305 }
 0x261   :  { %v307_v16 = vsub.f32 %v300_v12, %v306_v15  ;;  %v503_v12 = vld [vmem:[%s2118_s7 + $0x18] sm:$0xff]  ;;  %v655_v15 = vld [vmem:[#allocation15 + $0x18] sm:$0xff] }
 0x263   :  { %v308_v17 = vmul.f32 1.442695, %v307_v16 }
 0x265   :  { %1348 = vpow2.f32 %v308_v17  ;;  %v1314_v17 = vpack.c.bf16 %v503_v12, %v502_v11 }
 0x26f   :  { %v1349_v18 = vpop.eup %1348 }
 0x270   :  { %v310_v19 = vsel %vm303_vm3, %v1349_v18, 0.0 }
 0x271   :  { %311 = vadd.xlane.f32.xlu0 %v310_v19  ;;  %v1320_v19 = vpack.c.bf16 %v655_v15, %v654_v14 }
 0x2fe   :  { %v312_v22 = vpop.xlane.xlu0 %311 }
 0x2ff   :  { %1350 = vrcp.f32 %v312_v22  ;;  %v994_v22 = vld [vmem:[%s2126_s15] sm:$0xff] }
 0x300   :  { %v1323_v25 = vpack.c.bf16 %v995_v23, %v994_v22 }
 0x309   :  { %v1351_v29 = vpop.eup %1350 }
 0x30a   :  { %v314_v30 = vmul.f32 %v1351_v29, %v1349_v18 }
 0x30c   :  { %v322_v33 = vrot.slane %v314_v30, %v321_v28 }
 0x30e   :  { %v330_v37 = vrot.slane %v322_v33, %v321_v28  ;;  %v323_v38 = vcombine.high %v322_v33, %v322_v33 }
 0x310   :  { %1196 = vmatmul.mubr.msk.f32.vlgmr.msra.gmra.mrb[2].mxu0 %vm340_vm4, %v330_v37  ;;  %v337_v42 = vrot.slane %v323_v38, %v321_v28  ;;  %v1128_v28 = vld [vmem:[#allocation17] ss:$0 sm:$0xff] }
 0x311   :  { %1294 = vmatpush3.bf16.msra.mxu0 %v1293_v36  ;;  %1222 = vmatprep.mubr.msk.f32.mxu0 %vm1707_vm0, %v1708_v1 }
 0x312   :  { %1201 = vmatmul.mubr.msk.f32.vlgmr.msra.gmra.mrb[0].mxu1 %vm340_vm4, %v337_v42  ;;  %1295 = vmatprep.subr.bf16.mxu0 %v1706_v0 }
 0x313   :  { %1288 = vmatpush3.bf16.msra.mxu1 %v1287_v41  ;;  %1211 = vmatprep.mubr.msk.f32.mxu1 %vm1707_vm0, %v1708_v1 }
 0x314   :  { %1289 = vmatprep.subr.bf16.mxu1 %v1706_v0 }
 0x315   :  { %1297 = vmatpush3.bf16.msra.mxu0 %v1296_v45  ;;  %v1135_v45 = vld [vmem:[#allocation21] ss:$0 sm:$0xff] }
 0x316   :  { %1304 = vmatprep.subr.bf16.mxu0 %v1706_v0 }
 0x317   :  { %1291 = vmatpush3.bf16.msra.mxu1 %v1290_v46 }
 0x318   :  { %1298 = vmatprep.subr.bf16.mxu1 %v1706_v0  ;;  %1223 = vmatmul.mubr.msk.f32.vlgmr.msra.gmra.mrb[4].mxu0 %vm229_vm2, %v2001_v9 }
 0x319   :  { %1244 = vmatprep.mubr.msk.f32.mxu0 %vm1707_vm0, %v1708_v1  ;;  %1306 = vmatpush3.bf16.msra.mxu0 %v1305_v52 }
 0x31a   :  { %1212 = vmatmul.mubr.msk.f32.vlgmr.msra.gmra.mrb[2].mxu1 %vm229_vm2, %v2001_v9  ;;  %1307 = vmatprep.subr.bf16.mxu0 %v1706_v0 }
 0x31b   :  { %1233 = vmatprep.mubr.msk.f32.mxu1 %vm1707_vm0, %v1708_v1  ;;  %1300 = vmatpush3.bf16.msra.mxu1 %v1299_v49 }
 0x31c   :  { %1301 = vmatprep.subr.bf16.mxu1 %v1706_v0 }
 0x31d   :  { %1309 = vmatpush3.bf16.msra.mxu0 %v1308_v58 }
 0x31e   :  { %1316 = vmatprep.subr.bf16.mxu0 %v1706_v0 }
 0x31f   :  { %1303 = vmatpush3.bf16.msra.mxu1 %v1302_v55 }
 0x320   :  { %1310 = vmatprep.subr.bf16.mxu1 %v1706_v0 }
 0x3e3   :  { %v409_v59 = vpop.f32.mrb[2].mxu0 }
 0x3e4   :  { %v1197_v60 = vpop.f32.mrb[3].mxu0 }
 0x3e5   :  { %v481_v61 = vpop.f32.mrb[0].mxu1 }
 0x3e6   :  { %v487_v3 = vrot.slane %v481_v61, 7  ;;  %v1202_v4 = vpop.f32.mrb[1].mxu1 }
 0x3e8   :  { %v489_v7 = vsel %vm488_vm5, %v487_v3, %v409_v59  ;;  %v998_v59 = vld [vmem:[%s2127_s16] sm:$0x1] }
 0x3e9   :  { %v491_v10 = vadd.f32 %v489_v7, %v217_v2 }
 0x3eb   :  { %1234 = vmatmul.mubr.msk.f32.vlgmr.msra.gmra.mrb[4].mxu1 %vm229_vm2, %v491_v10  ;;  %1245 = vmatmul.mubr.msk.f32.vlgmr.msra.gmra.mrb[6].mxu0 %vm229_vm2, %v491_v10  ;;  %v648_v16 = vpop.f32.mrb[4].mxu0 }
 0x3ec   :  { %1312 = vmatpush3.bf16.msra.mxu1 %v1311_v8  ;;  %1255 = vmatprep.mubr.msk.f32.mxu1 %vm1707_vm0, %v1708_v1  ;;  %v1224_v18 = vpop.f32.mrb[5].mxu0 }
 0x3ed   :  { %1313 = vmatprep.subr.bf16.mxu1 %v1706_v0  ;;  %1318 = vmatpush3.bf16.msra.mxu0 %v1317_v13  ;;  %v574_v20 = vpop.f32.mrb[2].mxu1 }
 0x3ee   :  { %1319 = vmatprep.subr.bf16.mxu0 %v1706_v0  ;;  %1266 = vmatprep.mubr.msk.f32.mxu0 %vm1707_vm0, %v1708_v1  ;;  %v1213_v21 = vpop.f32.mrb[3].mxu1 }
 0x3f0   :  { %1315 = vmatpush3.bf16.msra.mxu1 %v1314_v17 }
 0x3f1   :  { %1321 = vmatpush3.bf16.msra.mxu0 %v1320_v19  ;;  %1322 = vmatprep.subr.bf16.mxu1 %v1706_v0 }
 0x3f3   :  { %1256 = vmatmul.mubr.msk.f32.vlgmr.msra.gmra.mrb[6].mxu1 %vm229_vm2, %v491_v10 }
 0x3f4   :  { %1267 = vmatmul.mubr.msk.f32.vlgmr.msra.gmra.mrb[8].mxu0 %vm229_vm2, %v2001_v9  ;;  %1277 = vmatprep.mubr.msk.f32.mxu1 %vm1707_vm0, %v1708_v1 }
 0x3f5   :  { %1324 = vmatpush3.bf16.msra.mxu1 %v1323_v25 }
 0x3f6   :  { %1325 = vmatprep.subr.bf16.mxu1 %v1706_v0 }
 0x3f9   :  { %1327 = vmatpush3.bf16.msra.mxu1 %v1326_v27 }
 0x4be   :  { %v725_v1 = vpop.f32.mrb[4].mxu1  ;;  %v809_v29 = vpop.f32.mrb[6].mxu0 }
 0x4bf   :  { %v726_v30 = vadd.f32 %v725_v1, %v574_v20  ;;  %v810_v31 = vadd.f32 %v809_v29, %v648_v16  ;;  %v1235_v32 = vpop.f32.mrb[5].mxu1  ;;  %v1246_v33 = vpop.f32.mrb[7].mxu0 }
 0x4c1   :  { %v736_v34 = vadd.f32 %v1128_v28, %v726_v30  ;;  %v820_v37 = vadd.f32 %v1131_v35, %v810_v31 }
 0x4c3   :  { %v1129_v36 = vmul.f32 -1.442695, %v736_v34  ;;  %v1132_v41 = vmul.f32 -1.442695, %v820_v37 }
 0x4c5   :  { %1352 = vpow2.f32 %v1129_v36 }
 0x4c6   :  { %v900_v38 = vpop.f32.mrb[6].mxu1  ;;  %1354 = vpow2.f32 %v1132_v41 }
 0x4c7   :  { %v1257_v39 = vpop.f32.mrb[7].mxu1  ;;  %v977_v40 = vpop.f32.mrb[8].mxu0  ;;  %v901_v50 = vadd.f32 %v1133_v48, %v900_v38 }
 0x4c8   :  { %v1268_v42 = vpop.f32.mrb[9].mxu0  ;;  %v978_v47 = vadd.f32 %v1135_v45, %v977_v40 }
 0x4cf   :  { %v1353_v0 = vpop.eup %1352 }
 0x4d0   :  { %v740_v43 = vadd.f32 1.0, %v1353_v0  ;;  %v1355_v44 = vpop.eup %1354 }
 0x4d1   :  { %v824_v46 = vadd.f32 1.0, %v1355_v44 }
 0x4d2   :  { %1356 = vrcp.f32 %v740_v43 }
 0x4d3   :  { %1358 = vrcp.f32 %v824_v46 }
 0x4dc   :  { %v1357_v49 = vpop.eup %1356 }
 0x4dd   :  { %v981_v51 = vmul.f32 %v1357_v49, %v978_v47  ;;  %v1359_v53 = vpop.eup %1358 }
 0x4de   :  { %v984_v54 = vsub.f32 1.0, %v1359_v53  ;;  %v986_v57 = vmul.f32 %v1359_v53, %v2001_v9 }
 0x4df   :  { %v982_v52 = vadd.f32 %v981_v51, %v901_v50 }
 0x4e1   :  { %1360 = vtanh.f32 %v982_v52 }
 0x4eb   :  { %v1361_v55 = vpop.eup %1360 }
 0x4ec   :  { %v985_v56 = vmul.f32 %v1361_v55, %v984_v54 }
 0x4ee   :  { %v987_v58 = vadd.f32 %v986_v57, %v985_v56 }
 0x4f0   :  { %989 = vst.msk [vmem:[#allocation2] sm:$0x3] %vm214_vm1, %v987_v58  ;;  %1278 = vmatmul.mubr.msk.f32.vlgmr.msra.gmra.mrb[8].mxu1 %vm229_vm2, %v987_v58  ;;  %993 = vst.msk [vmem:[#allocation24] sm:$0x3] %vm214_vm1, %v987_v58 }
 0x5c3   :  { %v1068_v60 = vpop.f32.mrb[8].mxu1 }
 0x5c4   :  { %v1069_v61 = vadd.f32 %v1068_v60, %v998_v59  ;;  %v1279_v62 = vpop.f32.mrb[9].mxu1 }
 0x5c6   :  { %v1073_v63 = vsel %vm1072_vm6, %v1069_v61, -inf }
 0x5c7   :  { %1074 = vmax.xlane.f32.xlu1 %v1073_v63 }
 0x654   :  { %v1075_v2 = vpop.xlane.xlu1 %1074 }
 0x655   :  { %v1076_v3 = vsub.f32 %v1069_v61, %v1075_v2 }
 0x657   :  { %v1077_v9 = vmul.f32 1.442695, %v1076_v3 }
 0x659   :  { %1362 = vpow2.f32 %v1077_v9 }
 0x663   :  { %v1363_v4 = vpop.eup %1362 }
 0x664   :  { %v1079_v5 = vsel %vm1072_vm6, %v1363_v4, 0.0 }
 0x665   :  { %1080 = vadd.xlane.f32.xlu1 %v1079_v5 }
 0x666   :  { %1641 = shalt.err (!%p1638_p2)
}
 0x667   :  { %s1642_s11 = scalar_lea.hbm %s2129_s18, 32 }
 0x668   :  { %p1643_p3 = scmp.ne.s32.totalorder %s2129_s18, %s1642_s11  ;;  %p1646_p4 = scmp.lt.u32.totalorder %s1642_s11, %s2129_s18 }
 0x66a   :  { %p1648_p5 = pnand %p1646_p4, %p1643_p3 }
 0x66c   :  { %1651 = shalt.err (!%p1648_p5)
}
 0x66d   :  { %1105 = dma.vmem_to_hbm [thread:$0]  %s1103_s24, 32, %s2129_s18, [#allocation25]  }
 0x66e   :  { %s1711_s21 = smov [#allocation23]  }
 0x66f   :  { %s1092_s5 = sshll.u32 %s1711_s21, 4  ;;  %s1093_s5 = int_to_ptr.vmem [resolvable:$true] %s1092_s5 }
 0x670   :  { %s1652_s12 = scalar_lea.vmem %s1093_s5, 16  ;;  %s1656_s9 = scalar_lea.vmem %s1093_s5, 32 }
 0x671   :  { %p1653_p6 = scmp.ne.s32.totalorder %s1093_s5, %s1652_s12  ;;  %p1657_p7 = scmp.lt.s32.totalorder %s1093_s5, %s1093_s5 }
 0x672   :  { %p1658_p8 = scmp.lt.s32.totalorder %s1656_s9, %s1652_s12 }
 0x674   :  { %p1659_p9 = por %p1658_p8, %p1657_p7 }
 0x676   :  { %p1660_p10 = pnand %p1659_p9, %p1653_p6 }
 0x6f2   :  { %v1081_v6 = vpop.xlane.xlu1 %1080 }
 0x6f3   :  { %1364 = vlog2.f32 %v1081_v6 }
 0x6fd   :  { %v1365_v7 = vpop.eup %1364 }
 0x6fe   :  { %v1083_v8 = vmul.f32 0.6931472, %v1365_v7 }
 0x700   :  { %v1084_v10 = vsub.f32 %v1076_v3, %v1083_v8 }
 0x702   :  { %1085 = vst [vmem:[#allocation23] sm:$0x1] %v1084_v10 }
 0x703   :  { %1663 = shalt.err (!%p1660_p10)
}
 0x704   :  { %s1664_s18 = scalar_lea.hbm %s2128_s17, 16 }
 0x705   :  { %p1665_p11 = scmp.ne.s32.totalorder %s2128_s17, %s1664_s18  ;;  %p1668_p12 = scmp.lt.u32.totalorder %s1664_s18, %s2128_s17 }
 0x707   :  { %p1670_p13 = pnand %p1668_p12, %p1665_p11 }
 0x709   :  { %1673 = shalt.err (!%p1670_p13)
}
 0x70a   :  { %1095 = dma.vmem_to_hbm [thread:$0]  %s1093_s5, 16, %s2128_s17, [#allocation5]  }
 0x70b   :  { %1688 = dma.done.wait [#allocation5], 16  }
 0x70c   :  { %1689 = vsyncadd [#allocation5], 4294967280 }
 0x70d   :  { %1690 = dma.done.wait [#allocation25], 32  }
 0x70e   :  { %1691 = vsyncadd [#allocation25], 4294967264 }
 0x70f   :  { %1112 = vsyncpa [#allocation4], 1 }
 0x710   :  { %1113 = vsyncpa [#allocation7], 1 }
 0x711   :  { %1114 = vsyncpa [#allocation10], 1 }
 0x712   :  { %1115 = vsyncpa [#allocation13], 1 }
 0x713   :  { %1116 = vsyncpa [#allocation16], 1 }
 0x714   :  { %1117 = vsyncpa [#allocation19], 1 }
 0x715   :  { %1118 = vsyncpa [#allocation22], 1 }
 0x716   :  { %1119 = vsyncpa [#allocation5], 1 }
 0x717   :  { %1120 = vsyncpa [#allocation25], 1 }

</bundles_post_ra>
